<compile_context>
chip_gen: v6e
topology: v6e:2x2x1
jax: 0.10.0
libtpu: 0.0.40
codegen_flags: <defaults>
</compile_context>

<pallas_src>
import jax
import jax.numpy as jnp
from jax import lax
from jax.experimental import pallas as pl
from jax.experimental.pallas import tpu as pltpu


def _round_up(x: int, m: int) -> int:
    return ((x + m - 1) // m) * m


def _largest_divisor_tile(dim: int, unit: int, cap: int) -> int:
    """Largest multiple of `unit` that divides `dim` (itself a multiple of `unit`) and is <= cap."""
    cap = max(unit, min(cap, dim))
    t = (cap // unit) * unit
    while dim % t:
        t -= unit
    return t


def _vmem_budget_bytes() -> int:
    """Usable double-buffered VMEM budget for this chip generation."""
    cap = 64 << 20  # conservative fallback: v7x per-TensorCore VMEM
    try:
        info = pltpu.get_tpu_info()
        cap = int(getattr(info, "vmem_capacity_bytes", cap)) or cap
    except Exception:
        pass
    # Leave headroom for compiler scratch; never ask for more than ~100 MiB.
    return max(32 << 20, min(int(cap * 0.7), 100 << 20))


# ----------------------------------------------------------------------------- kernels
def _linear_kernel_single_k(x_ref, w_ref, b_ref, o_ref):
    """y = x @ W^T + b, whole K in one tile (no reduction axis)."""
    o_ref[...] = (
        lax.dot_general(
            x_ref[...], w_ref[...],
            dimension_numbers=(((1,), (1,)), ((), ())),   # contract last dims (NT, MXU-native)
            preferred_element_type=jnp.float32,
        )
        + b_ref[...]
    ).astype(o_ref.dtype)


def _linear_kernel_k_loop(x_ref, w_ref, b_ref, o_ref):
    """One (i, j, k) step of y = x @ W^T + b, accumulating directly into the f32 output tile."""
    k = pl.program_id(2)

    @pl.when(k == 0)
    def _init():
        o_ref[...] = jnp.zeros_like(o_ref)

    o_ref[...] += lax.dot_general(
        x_ref[...], w_ref[...],
        dimension_numbers=(((1,), (1,)), ((), ())),
        preferred_element_type=jnp.float32,
    ).astype(o_ref.dtype)

    @pl.when(k == pl.num_programs(2) - 1)
    def _finalize():
        o_ref[...] += b_ref[...].astype(o_ref.dtype)


# ----------------------------------------------------------------------------- planning
def plan_linear(B: int, In: int, Out: int, dtype_bytes: int = 4) -> dict:
    budget = _vmem_budget_bytes()
    if budget >= 80 << 20:        # v5e / v6e class (128 MiB physical VMEM)
        tn_cap, tk_cap = 1024, 4096
    elif budget >= 40 << 20:      # v7x class (64 MiB per TensorCore)
        tn_cap, tk_cap = 512, 2048
    else:
        tn_cap, tk_cap = 256, 1024

    Bp = _round_up(B, 8)
    Np = _round_up(Out, 128)
    Kp = _round_up(In, 128)

    tm = _largest_divisor_tile(Bp, 8, 128)
    tn = _largest_divisor_tile(Np, 128, tn_cap)
    tk = _largest_divisor_tile(Kp, 128, tk_cap)

    # Megacore: if the M grid is a single block, make sure N splits across >= 2 cores.
    if Bp // tm == 1 and Np // tn == 1 and Np >= 256:
        tn = _largest_divisor_tile(Np, 128, Np // 2)

    def footprint(tm_, tn_, tk_):  # double-buffered x, w, out, bias tiles
        return dtype_bytes * (2 * tm_ * tk_ + 2 * tn_ * tk_ + 2 * tm_ * tn_ + 2 * tn_)

    while footprint(tm, tn, tk) > budget and tk > 128:
        tk = _largest_divisor_tile(Kp, 128, tk - 128)
    while footprint(tm, tn, tk) > budget and tn > 128:
        tn = _largest_divisor_tile(Np, 128, tn - 128)

    return dict(
        B=B, In=In, Out=Out,
        Bp=Bp, Np=Np, Kp=Kp, tm=tm, tn=tn, tk=tk,
        grid=(Bp // tm, Np // tn, Kp // tk),
        vmem_limit=budget,
    )


def pad_linear_params(weight, bias, plan):
    """One-time (init-time) padding of the PyTorch-layout params; NOT in the per-call path."""
    Out, In = weight.shape
    Np, Kp = plan["Np"], plan["Kp"]
    wp = weight if (Np == Out and Kp == In) else jnp.pad(weight, ((0, Np - Out), (0, Kp - In)))
    bp = bias if Np == Out else jnp.pad(bias, (0, Np - Out))
    return wp, bp.reshape(1, Np)


def make_linear_call(plan, out_dtype=jnp.float32):
    tm, tn, tk = plan["tm"], plan["tn"], plan["tk"]
    Bp, Np, Kp = plan["Bp"], plan["Np"], plan["Kp"]
    gm, gn, gk = plan["grid"]

    cost = pl.CostEstimate(
        flops=2 * Bp * Kp * Np,
        transcendentals=0,
        bytes_accessed=4 * (Bp * Kp + Np * Kp + Np + Bp * Np),
    )

    if gk == 1:
        kernel = _linear_kernel_single_k
        grid = (gm, gn)
        in_specs = [
            pl.BlockSpec((tm, tk), lambda i, j: (i, 0)),   # x tile
            pl.BlockSpec((tn, tk), lambda i, j: (j, 0)),   # weight tile [Out, In]
            pl.BlockSpec((1, tn), lambda i, j: (0, j)),    # bias tile
        ]
        out_specs = pl.BlockSpec((tm, tn), lambda i, j: (i, j))
        semantics = ("parallel", "parallel")
    else:
        kernel = _linear_kernel_k_loop
        grid = (gm, gn, gk)
        in_specs = [
            pl.BlockSpec((tm, tk), lambda i, j, k: (i, k)),
            pl.BlockSpec((tn, tk), lambda i, j, k: (j, k)),
            pl.BlockSpec((1, tn), lambda i, j, k: (0, j)),
        ]
        out_specs = pl.BlockSpec((tm, tn), lambda i, j, k: (i, j))
        semantics = ("parallel", "parallel", "arbitrary")

    return pl.pallas_call(
        kernel,
        out_shape=jax.ShapeDtypeStruct((Bp, Np), out_dtype),
        grid=grid,
        in_specs=in_specs,
        out_specs=out_specs,
        compiler_params=pltpu.CompilerParams(
            dimension_semantics=semantics,
            vmem_limit_bytes=plan["vmem_limit"],
        ),
        cost_estimate=cost,
    )


def make_simple_model_forward(plan):
    """Returns a jitted forward(x, weight_padded, bias_padded) -> [B, Out]."""
    call = make_linear_call(plan)
    B, In, Out = plan["B"], plan["In"], plan["Out"]
    Bp, Kp, Np = plan["Bp"], plan["Kp"], plan["Np"]

    def forward(x, wp, b2):
        xp = x if (Bp == B and Kp == In) else jnp.pad(x, ((0, Bp - B), (0, Kp - In)))
        out_padded = call(xp, wp, b2)
        if Bp == B and Np == Out:
            return out_padded
        return out_padded[:B, :Out]

    return jax.jit(forward)


if __name__ == "__main__":
    # Small shapes consistent with SimpleModel(input_size, output_size)
    batch, input_size, output_size = 8, 32, 16

    key = jax.random.PRNGKey(0)
    kx, kw, kb = jax.random.split(key, 3)

    x = jax.random.normal(kx, (batch, input_size), dtype=jnp.float32)
    # PyTorch-style uniform init with bound 1/sqrt(fan_in)
    bound = 1.0 / (input_size ** 0.5)
    weight = jax.random.uniform(kw, (output_size, input_size),
                                minval=-bound, maxval=bound, dtype=jnp.float32)
    bias = jax.random.uniform(kb, (output_size,),
                              minval=-bound, maxval=bound, dtype=jnp.float32)

    # Init-time work (done once): plan tiling, pad params, build/jit the kernel call.
    plan = plan_linear(batch, input_size, output_size)
    wp, b2 = pad_linear_params(weight, bias, plan)
    fwd = make_simple_model_forward(plan)

    out = fwd(x, wp, b2)
    jax.block_until_ready(out)

    # Cross-check against plain JAX reference
    ref = x @ weight.T + bias
    assert out.shape == (batch, output_size)
    assert jnp.allclose(out, ref, atol=1e-5, rtol=1e-5)

    print("KERNEL_OK")
</pallas_src>

<mosaic_0001>
module attributes {stable_mosaic.version = 11 : i64} {
  func.func @_linear_kernel_single_k(%arg0: i32, %arg1: i32, %arg2: memref<8x128xf32, #tpu.memory_space<vmem>>, %arg3: memref<128x128xf32, #tpu.memory_space<vmem>>, %arg4: memref<1x128xf32, #tpu.memory_space<vmem>>, %arg5: memref<8x128xf32, #tpu.memory_space<vmem>>) attributes {dimension_semantics = [#tpu.dimension_semantics<parallel>, #tpu.dimension_semantics<parallel>], iteration_bounds = array<i64: 1, 1>, scalar_prefetch = 0 : i64, scratch_operands = 0 : i64, tpu.core_type = #tpu.core_type<tc>, window_params = [{transform_indices = @transform_0, window_bounds = array<i64: 8, 128>}, {transform_indices = @transform_1, window_bounds = array<i64: 128, 128>}, {transform_indices = @transform_2, window_bounds = array<i64: 1, 128>}, {transform_indices = @transform_3, window_bounds = array<i64: 8, 128>}]} {
    %c0 = arith.constant 0 : index
    %c0_0 = arith.constant 0 : index
    %0 = vector.load %arg2[%c0, %c0_0] : memref<8x128xf32, #tpu.memory_space<vmem>>, vector<8x128xf32>
    %c0_1 = arith.constant 0 : index
    %c0_2 = arith.constant 0 : index
    %1 = vector.load %arg3[%c0_1, %c0_2] : memref<128x128xf32, #tpu.memory_space<vmem>>, vector<128x128xf32>
    %cst = arith.constant dense<0.000000e+00> : vector<8x128xf32>
    %2 = tpu.matmul %0, %1, %cst {dimension_numbers = #tpu.dot_dimension_numbers<[1], [1], [0], [0], [0, 0, 1, 0], [], []>} : vector<8x128xf32>, vector<128x128xf32>, vector<8x128xf32> -> vector<8x128xf32>
    %c0_3 = arith.constant 0 : index
    %c0_4 = arith.constant 0 : index
    %3 = vector.load %arg4[%c0_3, %c0_4] : memref<1x128xf32, #tpu.memory_space<vmem>>, vector<1x128xf32>
    %4 = vector.broadcast %3 : vector<1x128xf32> to vector<8x128xf32>
    %5 = arith.addf %2, %4 : vector<8x128xf32>
    %c0_5 = arith.constant 0 : index
    %c0_6 = arith.constant 0 : index
    %6 = vector.load %arg5[%c0_5, %c0_6] : memref<8x128xf32, #tpu.memory_space<vmem>>, vector<8x128xf32>
    tpu.vector_store %arg5[%c0_5, %c0_6], %5 {strides = array<i32>} : memref<8x128xf32, #tpu.memory_space<vmem>>, vector<8x128xf32>,
    return
  }
  func.func @transform_0(%arg0: i32, %arg1: i32) -> (i32, i32) {
    %c0_i32 = arith.constant 0 : i32
    %c0_i32_0 = arith.constant 0 : i32
    return %arg0, %c0_i32 : i32, i32
  }
  func.func @transform_1(%arg0: i32, %arg1: i32) -> (i32, i32) {
    %c0_i32 = arith.constant 0 : i32
    %c0_i32_0 = arith.constant 0 : i32
    return %arg1, %c0_i32 : i32, i32
  }
  func.func @transform_2(%arg0: i32, %arg1: i32) -> (i32, i32) {
    %c0_i32 = arith.constant 0 : i32
    %c0_i32_0 = arith.constant 0 : i32
    return %c0_i32, %arg1 : i32, i32
  }
  func.func @transform_3(%arg0: i32, %arg1: i32) -> (i32, i32) {
    %c0_i32 = arith.constant 0 : i32
    return %arg0, %arg1 : i32, i32
  }
}

</mosaic_0001>

<bundles_post_ra>
// kernel: forward.1
= control target key start
LH: loop header
LB: loop body
LE: loop exit
PB: predicated region body
PF: predicated region fallthrough
CT: control target
= control target key end

     0   :  { %8 = vsyncpa [#allocation3], 0  ;;  %s280_s0 = inlined_call_operand.vmem [shape: f32[8,128], index: 0, kind: input, shape index: {}]   ;;  %s281_s1 = inlined_call_operand.hbm [shape: f32[128,128], index: 1, kind: input, shape index: {}]   ;;  %s282_s2 = inlined_call_operand.vmem [shape: f32[1,128], index: 2, kind: input, shape index: {}]   ;;  %s283_s3 = inlined_call_operand.hbm [shape: f32[8,128], index: 3, kind: output, shape index: {}]  }
   0x1   :  { %9 = vsyncpa [#allocation4], 0  ;;  %s242_s12 = smov [#allocation2]  }
   0x2   :  { %s17_s13 = sshll.u32 %s242_s12, 4  ;;  %s18_s13 = int_to_ptr.vmem [resolvable:$true] %s17_s13 }
   0x3   :  { %s206_s14 = scalar_lea.vmem %s18_s13, 2048  ;;  %p211_p1 = scmp.lt.s32.totalorder %s18_s13, %s18_s13 }
   0x4   :  { %p207_p0 = scmp.ne.s32.totalorder %s18_s13, %s206_s14  ;;  %p212_p2 = scmp.lt.s32.totalorder %s206_s14, %s206_s14 }
   0x6   :  { %p213_p3 = por %p212_p2, %p211_p1 }
   0x8   :  { %p214_p4 = pnand %p213_p3, %p207_p0 }
   0xa   :  { %217 = shalt.err (!%p214_p4)
}
   0xb   :  { %s243_s15 = smov 128   ;;  %s244_s16 = smov 8  }
   0xc   :  { %23 = dma.hbm_to_vmem [thread:$0]  %s281_s1, 2048, %s18_s13, [#allocation3], %s243_s15, %s243_s15, %s244_s16  }
   0xd   :  { %238 = dma.done.wait [#allocation3], 2048  }
   0xe   :  { %239 = vsyncadd [#allocation3], 4294965248  ;;  %v245_v0 = vmov 0.0   ;;  %vm246_vm0 = vmmov 0   ;;  %v45_v1 = vld [vmem:[#allocation2 + $0x78] sm:$0xff]  ;;  %v44_v2 = vld [vmem:[#allocation2 + $0x70] sm:$0xff] }
   0xf   :  { %157 = vmatprep.subr.mxu0 %v245_v0  ;;  %189 = vmatprep.mubr.msk.f32.mxu0 %vm246_vm0, %v245_v0  ;;  %v43_v3 = vld [vmem:[#allocation2 + $0x68] sm:$0xff]  ;;  %v42_v4 = vld [vmem:[#allocation2 + $0x60] sm:$0xff]  ;;  %v41_v5 = vld [vmem:[#allocation2 + $0x58] sm:$0xff]  ;;  %s247_s22 = smov [#allocation5]  }
  0x10   :  { %158 = vmatpush3.xpose.msra.mxu0 %v45_v1  ;;  %v40_v6 = vld [vmem:[#allocation2 + $0x50] sm:$0xff]  ;;  %v39_v7 = vld [vmem:[#allocation2 + $0x48] sm:$0xff]  ;;  %v38_v8 = vld [vmem:[#allocation2 + $0x40] sm:$0xff]  ;;  %s130_s23 = sshll.u32 %s247_s22, 4  ;;  %s131_s23 = int_to_ptr.vmem [resolvable:$true] %s130_s23 }
  0x11   :  { %159 = vmatprep.subr.mxu0 %v245_v0  ;;  %v37_v9 = vld [vmem:[#allocation2 + $0x38] sm:$0xff]  ;;  %v36_v10 = vld [vmem:[#allocation2 + $0x30] sm:$0xff]  ;;  %v35_v11 = vld [vmem:[#allocation2 + $0x28] sm:$0xff]  ;;  %s218_s24 = scalar_lea.vmem %s131_s23, 128  ;;  %p223_p6 = scmp.lt.s32.totalorder %s131_s23, %s131_s23 }
  0x12   :  { %v34_v12 = vld [vmem:[#allocation2 + $0x20] sm:$0xff]  ;;  %v33_v13 = vld [vmem:[#allocation2 + $0x18] sm:$0xff]  ;;  %v32_v14 = vld [vmem:[#allocation2 + $0x10] sm:$0xff]  ;;  %p219_p5 = scmp.ne.s32.totalorder %s131_s23, %s218_s24  ;;  %p224_p7 = scmp.lt.s32.totalorder %s218_s24, %s218_s24 }
  0x13   :  { %v31_v15 = vld [vmem:[#allocation2 + $0x8] sm:$0xff]  ;;  %v30_v16 = vld [vmem:[#allocation2] sm:$0xff] }
  0x14   :  { %160 = vmatpush3.xpose.msra.mxu0 %v44_v2  ;;  %v29_v17 = vld [vmem:[%s280_s0] sm:$0xff]  ;;  %p225_p8 = por %p224_p7, %p223_p6 }
  0x15   :  { %161 = vmatprep.subr.mxu0 %v245_v0  ;;  %v139_v18 = vld [vmem:[%s282_s2] ss:$0 sm:$0xff] }
  0x16   :  { %p226_p9 = pnand %p225_p8, %p219_p5 }
  0x18   :  { %162 = vmatpush3.xpose.msra.mxu0 %v43_v3 }
  0x19   :  { %163 = vmatprep.subr.mxu0 %v245_v0 }
  0x1c   :  { %164 = vmatpush3.xpose.msra.mxu0 %v42_v4 }
  0x1d   :  { %165 = vmatprep.subr.mxu0 %v245_v0 }
  0x20   :  { %166 = vmatpush3.xpose.msra.mxu0 %v41_v5 }
  0x21   :  { %167 = vmatprep.subr.mxu0 %v245_v0 }
  0x24   :  { %168 = vmatpush3.xpose.msra.mxu0 %v40_v6 }
  0x25   :  { %169 = vmatprep.subr.mxu0 %v245_v0 }
  0x28   :  { %170 = vmatpush3.xpose.msra.mxu0 %v39_v7 }
  0x29   :  { %171 = vmatprep.subr.mxu0 %v245_v0 }
  0x2c   :  { %172 = vmatpush3.xpose.msra.mxu0 %v38_v8 }
  0x2d   :  { %173 = vmatprep.subr.mxu0 %v245_v0 }
  0x30   :  { %174 = vmatpush3.xpose.msra.mxu0 %v37_v9 }
  0x31   :  { %175 = vmatprep.subr.mxu0 %v245_v0 }
  0x34   :  { %176 = vmatpush3.xpose.msra.mxu0 %v36_v10 }
  0x35   :  { %177 = vmatprep.subr.mxu0 %v245_v0 }
  0x38   :  { %178 = vmatpush3.xpose.msra.mxu0 %v35_v11 }
  0x39   :  { %179 = vmatprep.subr.mxu0 %v245_v0 }
  0x3c   :  { %180 = vmatpush3.xpose.msra.mxu0 %v34_v12 }
  0x3d   :  { %181 = vmatprep.subr.mxu0 %v245_v0 }
  0x40   :  { %182 = vmatpush3.xpose.msra.mxu0 %v33_v13 }
  0x41   :  { %183 = vmatprep.subr.mxu0 %v245_v0 }
  0x44   :  { %184 = vmatpush3.xpose.msra.mxu0 %v32_v14 }
  0x45   :  { %185 = vmatprep.subr.mxu0 %v245_v0 }
  0x48   :  { %186 = vmatpush3.xpose.msra.mxu0 %v31_v15 }
  0x49   :  { %187 = vmatprep.subr.mxu0 %v245_v0 }
  0x4c   :  { %188 = vmatpush3.xpose.msra.mxu0 %v30_v16 }
  0x4f   :  { %190 = vmatmul.mubr.f32.vlgmr.msra.gmra.mxu0 %v29_v17 }
 0x10f   :  { %v119_v19 = vpop.f32.mrf.mxu0 }
 0x110   :  { %v120_v20 = vadd.f32 %v139_v18, %v119_v19 }
 0x111   :  { %v191_v21 = vpop.f32.mrf.mxu0 }
 0x112   :  { %123 = vst [vmem:[#allocation5] sm:$0xff] %v120_v20 }
 0x113   :  { %229 = shalt.err (!%p226_p9)
}
 0x114   :  { %133 = dma.vmem_to_hbm [thread:$0]  %s131_s23, 128, %s283_s3, [#allocation4]  }
 0x115   :  { %240 = dma.done.wait [#allocation4], 128  }
 0x116   :  { %241 = vsyncadd [#allocation4], 4294967168 }
 0x117   :  { %137 = vsyncpa [#allocation3], 1 }
 0x118   :  { %138 = vsyncpa [#allocation4], 1 }

</bundles_post_ra>
